<compile_context>
chip_gen: v7x
topology: tpu7x:2x2x1
jax: 0.10.0
libtpu: 0.0.40
codegen_flags: <defaults>
</compile_context>

<pallas_src>
import jax
import jax.numpy as jnp
from jax.experimental import pallas as pl
from jax.experimental.pallas import tpu as pltpu


# ----------------------------- small helpers --------------------------------

def _layernorm(x, g, b, eps=1e-5):
    # PyTorch nn.LayerNorm over the last dim: biased variance, eps=1e-5, f32 math.
    mu = jnp.mean(x, axis=-1, keepdims=True)
    var = jnp.mean((x - mu) ** 2, axis=-1, keepdims=True)
    return (x - mu) * jax.lax.rsqrt(var + eps) * g + b


def _round_up(x, m):
    return ((x + m - 1) // m) * m


def _pick_block(n, candidates):
    for c in candidates:
        if n >= c and n % c == 0:
            return c
    return n                      # full dim is always a legal block


# --------------------- fused transformer stack kernel -----------------------

def make_gpt2_stack_kernel(num_layers, heads, head_dim, seq_len, embed_size,
                           ff_hidden, tq):
    H, Dh, L, E, FF = heads, head_dim, seq_len, embed_size, ff_hidden
    q_steps = L // tq
    f32, bf16 = jnp.float32, jnp.bfloat16

    def kernel(x_ref, bias_ref,
               wqkv_ref, wo_ref, bo_ref,
               g1_ref, b1_ref, g2_ref, b2_ref,
               wff1_ref, bff1_ref, wff2_ref, bff2_ref,
               out_ref,
               h_scr, q_scr, k_scr, v_scr):
        layer = pl.program_id(1)
        qi = pl.program_id(2)

        # Residual stream becomes VMEM-resident once per batch element; every
        # layer then runs against the scratch copy (no inter-layer HBM traffic).
        @pl.when(jnp.logical_and(layer == 0, qi == 0))
        def _():
            h_scr[...] = x_ref[0]

        # Fused Q/K/V projection for the whole sequence, once per (batch, layer):
        # one (H*L, Dh) @ (Dh, 3*Dh) MXU matmul.  1/sqrt(E) is already folded
        # into the q columns of the fused weight (wrapper-side).
        @pl.when(qi == 0)
        def _():
            xh = jnp.transpose(h_scr[...].reshape(L, H, Dh), (1, 0, 2))   # (H,L,Dh)
            qkv = jnp.dot(xh.reshape(H * L, Dh).astype(bf16), wqkv_ref[0],
                          preferred_element_type=f32).reshape(H, L, 3 * Dh)
            q_scr[...] = qkv[..., 0:Dh].astype(bf16)
            k_scr[...] = qkv[..., Dh:2 * Dh].astype(bf16)
            v_scr[...] = qkv[..., 2 * Dh:3 * Dh].astype(bf16)

        row0 = pl.multiple_of(qi * tq, tq)

        # ---- attention: tq query rows vs the full resident K/V, all heads ----
        q = q_scr[:, pl.ds(row0, tq), :]                        # (H, tq, Dh) bf16
        s = jnp.einsum('hqd,hkd->hqk', q, k_scr[...],
                       preferred_element_type=f32)              # (H, tq, L) f32
        s = s + bias_ref[...]                                   # additive mask (f32)
        s = s - jnp.max(s, axis=-1, keepdims=True)
        p = jnp.exp(s)                                          # f32 softmax (v5e-safe)
        p = p * pl.reciprocal(jnp.sum(p, axis=-1, keepdims=True), approx=True)
        o = jnp.einsum('hqk,hkd->hqd', p.astype(bf16), v_scr[...],
                       preferred_element_type=f32)              # (H, tq, Dh) f32
        o = jnp.transpose(o, (1, 0, 2)).reshape(tq, E)          # (tq, H*Dh) == (tq, E)

        # fc_out collapsed to a single (tq, E) @ (E, E) matmul.
        attn = jnp.dot(o.astype(bf16), wo_ref[0],
                       preferred_element_type=f32) + bo_ref[0]

        # TODO(synk): nn.Dropout(p=0.1) treated as identity (inference mode).
        xq = h_scr[pl.ds(row0, tq), :]                          # layer input rows
        x1 = _layernorm(attn + xq, g1_ref[0], b1_ref[0])

        # TODO(synk): FeedForward is undefined in the reference snippet;
        # assumed Linear(E, FF) -> ReLU -> Linear(FF, E).
        hf = jnp.dot(x1.astype(bf16), wff1_ref[0], preferred_element_type=f32)
        hf = jnp.maximum(hf + bff1_ref[0], 0.0)
        ff = jnp.dot(hf.astype(bf16), wff2_ref[0], preferred_element_type=f32)
        y = _layernorm(ff + bff2_ref[0] + x1, g2_ref[0], b2_ref[0])

        h_scr[pl.ds(row0, tq), :] = y                           # update residual

        # After the last layer's last q-tile: emit the finished residual stream.
        @pl.when(jnp.logical_and(layer == num_layers - 1, qi == q_steps - 1))
        def _():
            out_ref[0] = h_scr[...]

    return kernel


def gpt2_stack_forward(h, mask_bias, p, *, num_layers, heads, head_dim, tq):
    N, L, E = h.shape
    FF = p['wff1'].shape[-1]
    Dh = head_dim

    def act_map(b, l, q):
        return (b, 0, 0)

    def layer_map(b, l, q):
        return (l, 0, 0)

    in_specs = [
        pl.BlockSpec((1, L, E), act_map),                  # residual stream in
        pl.BlockSpec((1, 1, L), act_map),                  # additive mask bias
        pl.BlockSpec((1, Dh, 3 * Dh), layer_map),          # fused wq|wk|wv
        pl.BlockSpec((1, E, E), layer_map),                # wo  (fc_out)
        pl.BlockSpec((1, 1, E), layer_map),                # bo
        pl.BlockSpec((1, 1, E), layer_map),                # ln1 gamma
        pl.BlockSpec((1, 1, E), layer_map),                # ln1 beta
        pl.BlockSpec((1, 1, E), layer_map),                # ln2 gamma
        pl.BlockSpec((1, 1, E), layer_map),                # ln2 beta
        pl.BlockSpec((1, E, FF), layer_map),               # wff1
        pl.BlockSpec((1, 1, FF), layer_map),               # bff1
        pl.BlockSpec((1, FF, E), layer_map),               # wff2
        pl.BlockSpec((1, 1, E), layer_map),                # bff2
    ]
    kernel = make_gpt2_stack_kernel(num_layers, heads, head_dim, L, E, FF, tq)
    return pl.pallas_call(
        kernel,
        out_shape=jax.ShapeDtypeStruct((N, L, E), jnp.float32),
        grid=(N, num_layers, L // tq),
        in_specs=in_specs,
        out_specs=pl.BlockSpec((1, L, E), act_map),
        scratch_shapes=[
            pltpu.VMEM((L, E), jnp.float32),                     # resident residual
            pltpu.VMEM((heads, L, head_dim), jnp.bfloat16),      # q (scaled)
            pltpu.VMEM((heads, L, head_dim), jnp.bfloat16),      # k
            pltpu.VMEM((heads, L, head_dim), jnp.bfloat16),      # v
        ],
        compiler_params=pltpu.CompilerParams(
            dimension_semantics=("parallel", "arbitrary", "arbitrary"),
            vmem_limit_bytes=48 * 1024 * 1024),
    )(h, mask_bias, p['wqkv'], p['wo'], p['bo'],
      p['g1'], p['b1'], p['g2'], p['b2'],
      p['wff1'], p['bff1'], p['wff2'], p['bff2'])


# ------------------------------- vocab head ----------------------------------

def logits_kernel(x_ref, w_ref, b_ref, out_ref):
    # (br, E) bf16 @ (E, bv) bf16 -> f32, + bias
    out_ref[...] = (jnp.dot(x_ref[...], w_ref[...],
                            preferred_element_type=jnp.float32) + b_ref[...])


def logits_forward(h, w_t, b, vocab_size, bv):
    N, L, E = h.shape
    R = N * L
    Vp = w_t.shape[1]                                   # padded (lane-dense) vocab
    x2 = h.reshape(R, E).astype(jnp.bfloat16)
    br = _pick_block(R, (2048, 1024, 512, 256, 128, 64, 32, 16))
    out = pl.pallas_call(
        logits_kernel,
        out_shape=jax.ShapeDtypeStruct((R, Vp), jnp.float32),
        grid=(R // br, Vp // bv),                       # vocab innermost: weight
        in_specs=[pl.BlockSpec((br, E), lambda r, v: (r, 0)),      # re-streamed only
                  pl.BlockSpec((E, bv), lambda r, v: (0, v)),      # R/br times
                  pl.BlockSpec((1, bv), lambda r, v: (0, v))],
        out_specs=pl.BlockSpec((br, bv), lambda r, v: (r, v)),
        compiler_params=pltpu.CompilerParams(
            dimension_semantics=("parallel", "parallel"),
            vmem_limit_bytes=48 * 1024 * 1024),
    )(x2, w_t, b)
    return out[:, :vocab_size].reshape(N, L, vocab_size)


# ------------------------------- model glue ----------------------------------

def _normal(key, shape, scale=0.02):
    return scale * jax.random.normal(key, shape, dtype=jnp.float32)


class GPT2Pallas:
    def __init__(self, embed_size, heads, ff_hidden_size, num_layers,
                 max_len, vocab_size, group_size=1, key=None):
        assert embed_size % heads == 0, 'Embedding size needs to be divisible by heads'
        head_dim = embed_size // heads
        # The reference GroupQueryAttention is shape-consistent only for
        # group_size == 1 (its nn.Linear(head_dim, head_dim) is applied to a
        # group-averaged query of width head_dim // group_size otherwise).
        assert group_size == 1, "reference module requires group_size == 1 to be runnable"

        self.embed_size = embed_size
        self.heads = heads
        self.head_dim = head_dim
        self.num_layers = num_layers
        self.vocab_size = vocab_size

        key = jax.random.PRNGKey(0) if key is None else key
        keys = jax.random.split(key, 3 + 6 * num_layers)
        ki = iter(range(len(keys)))
        bf16 = jnp.bfloat16
        scale = 1.0 / (embed_size ** 0.5)            # softmax scale, folded into wq

        self.tok_emb = _normal(keys[next(ki)], (vocab_size, embed_size))
        self.pos_emb = _normal(keys[next(ki)], (max_len, embed_size))

        wqkv, wo, wff1, wff2 = [], [], [], []
        for _ in range(num_layers):
            wq = _normal(keys[next(ki)], (head_dim, head_dim))
            wk = _normal(keys[next(ki)], (head_dim, head_dim))
            wv = _normal(keys[next(ki)], (head_dim, head_dim))
            w_o = _normal(keys[next(ki)], (embed_size, heads * head_dim))
            w_f1 = _normal(keys[next(ki)], (ff_hidden_size, embed_size))
            w_f2 = _normal(keys[next(ki)], (embed_size, ff_hidden_size))
            # (in, out) layouts for the MXU; scale folded into q columns (f32,
            # before the bf16 cast).
            wqkv.append(jnp.concatenate([wq.T * scale, wk.T, wv.T], axis=1))
            wo.append(w_o.T)                          # (heads*head_dim, E) == (E, E)
            wff1.append(w_f1.T)                       # (E, FF)
            wff2.append(w_f2.T)                       # (FF, E)

        NL, E, FF = num_layers, embed_size, ff_hidden_size
        self.layer_params = {
            'wqkv': jnp.stack(wqkv).astype(bf16),     # (NL, Dh, 3*Dh)
            'wo':   jnp.stack(wo).astype(bf16),       # (NL, E, E)
            'bo':   jnp.zeros((NL, 1, E), jnp.float32),
            'g1':   jnp.ones((NL, 1, E), jnp.float32),
            'b1':   jnp.zeros((NL, 1, E), jnp.float32),
            'g2':   jnp.ones((NL, 1, E), jnp.float32),
            'b2':   jnp.zeros((NL, 1, E), jnp.float32),
            'wff1': jnp.stack(wff1).astype(bf16),     # (NL, E, FF)
            'bff1': jnp.zeros((NL, 1, FF), jnp.float32),
            'wff2': jnp.stack(wff2).astype(bf16),     # (NL, FF, E)
            'bff2': jnp.zeros((NL, 1, E), jnp.float32),
        }

        # vocab head: pad vocab to a lane-dense multiple of the vocab block so
        # non-multiple-of-128 vocabs never fall back to a giant weight block.
        w_out = _normal(keys[next(ki)], (vocab_size, embed_size))
        self.bv = min(512, _round_up(vocab_size, 128))
        vp = _round_up(vocab_size, self.bv)
        self.w_out_t = jnp.pad(w_out.T, ((0, 0), (0, vp - vocab_size))).astype(bf16)
        self.b_out = jnp.zeros((1, vp), jnp.float32)

    def __call__(self, tokens, mask):
        N, L = tokens.shape
        positions = jnp.broadcast_to(jnp.arange(L, dtype=jnp.int32), (N, L))
        # embedding gathers kept in plain JAX (glue, not the hot path)
        h = (jnp.take(self.tok_emb, tokens, axis=0)
             + jnp.take(self.pos_emb, positions, axis=0))

        # additive mask bias computed once (reference: masked_fill(mask==0, -1e20))
        mask_bias = jnp.where(mask == 0, jnp.float32(-1e20),
                              jnp.float32(0.0)).reshape(N, 1, L)

        tq = _pick_block(L, (256, 128, 64, 32, 16, 8))
        h = gpt2_stack_forward(h, mask_bias, self.layer_params,
                               num_layers=self.num_layers, heads=self.heads,
                               head_dim=self.head_dim, tq=tq)
        return logits_forward(h, self.w_out_t, self.b_out, self.vocab_size, self.bv)


# --------------------------------- main --------------------------------------

if __name__ == "__main__":
    EMBED, HEADS, FF_HIDDEN = 32, 4, 64
    NUM_LAYERS, MAX_LEN, VOCAB = 2, 16, 64
    N, L = 2, 8

    model = GPT2Pallas(EMBED, HEADS, FF_HIDDEN, NUM_LAYERS, MAX_LEN, VOCAB,
                       group_size=1, key=jax.random.PRNGKey(0))

    kx, km = jax.random.split(jax.random.PRNGKey(42))
    tokens = jax.random.randint(kx, (N, L), 0, VOCAB, dtype=jnp.int32)
    mask = (jax.random.uniform(km, (N, L)) > 0.2).astype(jnp.float32)
    mask = mask.at[:, 0].set(1.0)   # at least one attendable key position

    out = model(tokens, mask)
    jax.block_until_ready(out)

    assert out.shape == (N, L, VOCAB), out.shape
    assert bool(jnp.all(jnp.isfinite(out)))
    print("KERNEL_OK")
</pallas_src>

<mosaic_0001>
module attributes {stable_mosaic.version = 11 : i64} {
  func.func @kernel(%arg0: i32, %arg1: i32, %arg2: i32, %arg3: memref<1x8x32xf32, #tpu.memory_space<vmem>>, %arg4: memref<1x1x8xf32, #tpu.memory_space<vmem>>, %arg5: memref<1x8x24xbf16, #tpu.memory_space<vmem>>, %arg6: memref<1x32x32xbf16, #tpu.memory_space<vmem>>, %arg7: memref<1x1x32xf32, #tpu.memory_space<vmem>>, %arg8: memref<1x1x32xf32, #tpu.memory_space<vmem>>, %arg9: memref<1x1x32xf32, #tpu.memory_space<vmem>>, %arg10: memref<1x1x32xf32, #tpu.memory_space<vmem>>, %arg11: memref<1x1x32xf32, #tpu.memory_space<vmem>>, %arg12: memref<1x32x64xbf16, #tpu.memory_space<vmem>>, %arg13: memref<1x1x64xf32, #tpu.memory_space<vmem>>, %arg14: memref<1x64x32xbf16, #tpu.memory_space<vmem>>, %arg15: memref<1x1x32xf32, #tpu.memory_space<vmem>>, %arg16: memref<1x8x32xf32, #tpu.memory_space<vmem>>, %arg17: memref<8x32xf32, #tpu.memory_space<vmem>>, %arg18: memref<4x8x8xbf16, #tpu.memory_space<vmem>>, %arg19: memref<4x8x8xbf16, #tpu.memory_space<vmem>>, %arg20: memref<4x8x8xbf16, #tpu.memory_space<vmem>>) attributes {dimension_semantics = [#tpu.dimension_semantics<parallel>, #tpu.dimension_semantics<arbitrary>, #tpu.dimension_semantics<arbitrary>], iteration_bounds = array<i64: 2, 2, 1>, scalar_prefetch = 0 : i64, scratch_operands = 4 : i64, tpu.core_type = #tpu.core_type<tc>, window_params = [{transform_indices = @transform_0, window_bounds = array<i64: 1, 8, 32>}, {transform_indices = @transform_1, window_bounds = array<i64: 1, 1, 8>}, {transform_indices = @transform_2, window_bounds = array<i64: 1, 8, 24>}, {transform_indices = @transform_3, window_bounds = array<i64: 1, 32, 32>}, {transform_indices = @transform_4, window_bounds = array<i64: 1, 1, 32>}, {transform_indices = @transform_5, window_bounds = array<i64: 1, 1, 32>}, {transform_indices = @transform_6, window_bounds = array<i64: 1, 1, 32>}, {transform_indices = @transform_7, window_bounds = array<i64: 1, 1, 32>}, {transform_indices = @transform_8, window_bounds = array<i64: 1, 1, 32>}, {transform_indices = @transform_9, window_bounds = array<i64: 1, 32, 64>}, {transform_indices = @transform_10, window_bounds = array<i64: 1, 1, 64>}, {transform_indices = @transform_11, window_bounds = array<i64: 1, 64, 32>}, {transform_indices = @transform_12, window_bounds = array<i64: 1, 1, 32>}, {transform_indices = @transform_13, window_bounds = array<i64: 1, 8, 32>}]} {
    %c0_i32 = arith.constant 0 : i32
    %0 = arith.cmpi eq, %arg1, %c0_i32 : i32
    %c0_i32_0 = arith.constant 0 : i32
    %1 = arith.cmpi eq, %arg2, %c0_i32_0 : i32
    %2 = arith.andi %0, %1 : i1
    %3 = arith.extui %2 : i1 to i32
    %c0_i32_1 = arith.constant 0 : i32
    %4 = arith.cmpi ne, %3, %c0_i32_1 : i32
    scf.if %4 {
      %c0_65 = arith.constant 0 : index
      %c0_66 = arith.constant 0 : index
      %c0_67 = arith.constant 0 : index
      %121 = vector.load %arg3[%c0_65, %c0_66, %c0_67] : memref<1x8x32xf32, #tpu.memory_space<vmem>>, vector<1x8x32xf32>
      %122 = vector.shape_cast %121 : vector<1x8x32xf32> to vector<8x32xf32>
      %c0_68 = arith.constant 0 : index
      %c0_69 = arith.constant 0 : index
      %123 = vector.load %arg17[%c0_68, %c0_69] : memref<8x32xf32, #tpu.memory_space<vmem>>, vector<8x32xf32>
      tpu.vector_store %arg17[%c0_68, %c0_69], %122 {strides = array<i32>} : memref<8x32xf32, #tpu.memory_space<vmem>>, vector<8x32xf32>,
    } else {
    }
    %c0_i32_2 = arith.constant 0 : i32
    %5 = arith.cmpi eq, %arg2, %c0_i32_2 : i32
    %6 = arith.extui %5 : i1 to i32
    %c0_i32_3 = arith.constant 0 : i32
    %7 = arith.cmpi ne, %6, %c0_i32_3 : i32
    scf.if %7 {
      %c0_65 = arith.constant 0 : index
      %c0_66 = arith.constant 0 : index
      %121 = vector.load %arg17[%c0_65, %c0_66] : memref<8x32xf32, #tpu.memory_space<vmem>>, vector<8x32xf32>
      %122 = vector.shape_cast %121 : vector<8x32xf32> to vector<8x4x8xf32>
      %123 = tpu.transpose %122, [1, 0, 2] : vector<8x4x8xf32> -> vector<4x8x8xf32>
      %124 = vector.shape_cast %123 : vector<4x8x8xf32> to vector<32x8xf32>
      %125 = arith.truncf %124 : vector<32x8xf32> to vector<32x8xbf16>
      %c0_67 = arith.constant 0 : index
      %c0_68 = arith.constant 0 : index
      %c0_69 = arith.constant 0 : index
      %126 = vector.load %arg5[%c0_67, %c0_68, %c0_69] : memref<1x8x24xbf16, #tpu.memory_space<vmem>>, vector<1x8x24xbf16>
      %127 = vector.shape_cast %126 : vector<1x8x24xbf16> to vector<8x24xbf16>
      %cst_70 = arith.constant dense<0.000000e+00> : vector<32x24xf32>
      %128 = tpu.matmul %125, %127, %cst_70 {dimension_numbers = #tpu.dot_dimension_numbers<[1], [0], [0], [1], [0, 0, 1, 1], [], []>} : vector<32x8xbf16>, vector<8x24xbf16>, vector<32x24xf32> -> vector<32x24xf32>
      %129 = vector.shape_cast %128 : vector<32x24xf32> to vector<4x8x24xf32>
      %130 = vector.extract_strided_slice %129 {offsets = [0, 0, 0], sizes = [4, 8, 8], strides = [1, 1, 1]} : vector<4x8x24xf32> to vector<4x8x8xf32>
      %131 = arith.truncf %130 : vector<4x8x8xf32> to vector<4x8x8xbf16>
      %c0_71 = arith.constant 0 : index
      %c0_72 = arith.constant 0 : index
      %c0_73 = arith.constant 0 : index
      %132 = vector.load %arg18[%c0_71, %c0_72, %c0_73] : memref<4x8x8xbf16, #tpu.memory_space<vmem>>, vector<4x8x8xbf16>
      tpu.vector_store %arg18[%c0_71, %c0_72, %c0_73], %131 {strides = array<i32>} : memref<4x8x8xbf16, #tpu.memory_space<vmem>>, vector<4x8x8xbf16>,
      %133 = vector.extract_strided_slice %129 {offsets = [0, 0, 8], sizes = [4, 8, 8], strides = [1, 1, 1]} : vector<4x8x24xf32> to vector<4x8x8xf32>
      %134 = arith.truncf %133 : vector<4x8x8xf32> to vector<4x8x8xbf16>
      %c0_74 = arith.constant 0 : index
      %c0_75 = arith.constant 0 : index
      %c0_76 = arith.constant 0 : index
      %135 = vector.load %arg19[%c0_74, %c0_75, %c0_76] : memref<4x8x8xbf16, #tpu.memory_space<vmem>>, vector<4x8x8xbf16>
      tpu.vector_store %arg19[%c0_74, %c0_75, %c0_76], %134 {strides = array<i32>} : memref<4x8x8xbf16, #tpu.memory_space<vmem>>, vector<4x8x8xbf16>,
      %136 = vector.extract_strided_slice %129 {offsets = [0, 0, 16], sizes = [4, 8, 8], strides = [1, 1, 1]} : vector<4x8x24xf32> to vector<4x8x8xf32>
      %137 = arith.truncf %136 : vector<4x8x8xf32> to vector<4x8x8xbf16>
      %c0_77 = arith.constant 0 : index
      %c0_78 = arith.constant 0 : index
      %c0_79 = arith.constant 0 : index
      %138 = vector.load %arg20[%c0_77, %c0_78, %c0_79] : memref<4x8x8xbf16, #tpu.memory_space<vmem>>, vector<4x8x8xbf16>
      tpu.vector_store %arg20[%c0_77, %c0_78, %c0_79], %137 {strides = array<i32>} : memref<4x8x8xbf16, #tpu.memory_space<vmem>>, vector<4x8x8xbf16>,
    } else {
    }
    %c8_i32 = arith.constant 8 : i32
    %8 = arith.muli %arg2, %c8_i32 : i32
    %9 = tpu.assume_multiple %8, 8 : i32
    %c0 = arith.constant 0 : index
    %10 = arith.index_cast %9 : i32 to index
    %c0_4 = arith.constant 0 : index
    %11 = vector.load %arg18[%c0, %10, %c0_4] : memref<4x8x8xbf16, #tpu.memory_space<vmem>>, vector<4x8x8xbf16>
    %c0_5 = arith.constant 0 : index
    %c0_6 = arith.constant 0 : index
    %c0_7 = arith.constant 0 : index
    %12 = vector.load %arg19[%c0_5, %c0_6, %c0_7] : memref<4x8x8xbf16, #tpu.memory_space<vmem>>, vector<4x8x8xbf16>
    "tpu.trace_start"() <{level = 10 : i32, message = "hqd,hkd->hqk"}> : () -> ()
    %cst = arith.constant dense<0.000000e+00> : vector<4x8x8xf32>
    %13 = tpu.matmul %11, %12, %cst {dimension_numbers = #tpu.dot_dimension_numbers<[2], [2], [1], [1], [0, 0, 0, 1, 1, 1], [0], [0]>} : vector<4x8x8xbf16>, vector<4x8x8xbf16>, vector<4x8x8xf32> -> vector<4x8x8xf32>
    "tpu.trace_stop"() : () -> ()
    %c0_8 = arith.constant 0 : index
    %c0_9 = arith.constant 0 : index
    %c0_10 = arith.constant 0 : index
    %14 = vector.load %arg4[%c0_8, %c0_9, %c0_10] : memref<1x1x8xf32, #tpu.memory_space<vmem>>, vector<1x1x8xf32>
    %15 = vector.broadcast %14 : vector<1x1x8xf32> to vector<4x8x8xf32>
    %16 = arith.addf %13, %15 : vector<4x8x8xf32>
    %cst_11 = arith.constant dense<0xFF800000> : vector<4x8xf32>
    %17 = vector.multi_reduction <maximumf>, %16, %cst_11 [2] : vector<4x8x8xf32> to vector<4x8xf32>
    %18 = vector.shape_cast %17 : vector<4x8xf32> to vector<4x8x1xf32>
    %19 = vector.broadcast %18 : vector<4x8x1xf32> to vector<4x8x8xf32>
    %20 = arith.subf %16, %19 : vector<4x8x8xf32>
    %21 = math.exp %20 : vector<4x8x8xf32>
    %cst_12 = arith.constant dense<0.000000e+00> : vector<4x8xf32>
    %22 = vector.multi_reduction <add>, %21, %cst_12 [2] : vector<4x8x8xf32> to vector<4x8xf32>
    %23 = vector.shape_cast %22 : vector<4x8xf32> to vector<4x8x1xf32>
    %24 = tpu.reciprocal %23 {approx = true} : vector<4x8x1xf32> -> vector<4x8x1xf32>
    %25 = vector.broadcast %24 : vector<4x8x1xf32> to vector<4x8x8xf32>
    %26 = arith.mulf %21, %25 : vector<4x8x8xf32>
    %27 = arith.truncf %26 : vector<4x8x8xf32> to vector<4x8x8xbf16>
    %c0_13 = arith.constant 0 : index
    %c0_14 = arith.constant 0 : index
    %c0_15 = arith.constant 0 : index
    %28 = vector.load %arg20[%c0_13, %c0_14, %c0_15] : memref<4x8x8xbf16, #tpu.memory_space<vmem>>, vector<4x8x8xbf16>
    "tpu.trace_start"() <{level = 10 : i32, message = "hqk,hkd->hqd"}> : () -> ()
    %cst_16 = arith.constant dense<0.000000e+00> : vector<4x8x8xf32>
    %29 = tpu.matmul %27, %28, %cst_16 {dimension_numbers = #tpu.dot_dimension_numbers<[2], [1], [1], [2], [0, 0, 0, 1, 1, 2], [0], [0]>} : vector<4x8x8xbf16>, vector<4x8x8xbf16>, vector<4x8x8xf32> -> vector<4x8x8xf32>
    "tpu.trace_stop"() : () -> ()
    %30 = tpu.transpose %29, [1, 0, 2] : vector<4x8x8xf32> -> vector<8x4x8xf32>
    %31 = vector.shape_cast %30 : vector<8x4x8xf32> to vector<8x32xf32>
    %32 = arith.truncf %31 : vector<8x32xf32> to vector<8x32xbf16>
    %c0_17 = arith.constant 0 : index
    %c0_18 = arith.constant 0 : index
    %c0_19 = arith.constant 0 : index
    %33 = vector.load %arg6[%c0_17, %c0_18, %c0_19] : memref<1x32x32xbf16, #tpu.memory_space<vmem>>, vector<1x32x32xbf16>
    %34 = vector.shape_cast %33 : vector<1x32x32xbf16> to vector<32x32xbf16>
    %cst_20 = arith.constant dense<0.000000e+00> : vector<8x32xf32>
    %35 = tpu.matmul %32, %34, %cst_20 {dimension_numbers = #tpu.dot_dimension_numbers<[1], [0], [0], [1], [0, 0, 1, 1], [], []>} : vector<8x32xbf16>, vector<32x32xbf16>, vector<8x32xf32> -> vector<8x32xf32>
    %c0_21 = arith.constant 0 : index
    %c0_22 = arith.constant 0 : index
    %c0_23 = arith.constant 0 : index
    %36 = vector.load %arg7[%c0_21, %c0_22, %c0_23] : memref<1x1x32xf32, #tpu.memory_space<vmem>>, vector<1x1x32xf32>
    %37 = vector.shape_cast %36 : vector<1x1x32xf32> to vector<1x32xf32>
    %38 = vector.broadcast %37 : vector<1x32xf32> to vector<8x32xf32>
    %39 = arith.addf %35, %38 : vector<8x32xf32>
    %40 = arith.index_cast %9 : i32 to index
    %c0_24 = arith.constant 0 : index
    %41 = vector.load %arg17[%40, %c0_24] : memref<8x32xf32, #tpu.memory_space<vmem>>, vector<8x32xf32>
    %42 = arith.addf %39, %41 : vector<8x32xf32>
    %c0_25 = arith.constant 0 : index
    %c0_26 = arith.constant 0 : index
    %c0_27 = arith.constant 0 : index
    %43 = vector.load %arg8[%c0_25, %c0_26, %c0_27] : memref<1x1x32xf32, #tpu.memory_space<vmem>>, vector<1x1x32xf32>
    %44 = vector.shape_cast %43 : vector<1x1x32xf32> to vector<1x32xf32>
    %c0_28 = arith.constant 0 : index
    %c0_29 = arith.constant 0 : index
    %c0_30 = arith.constant 0 : index
    %45 = vector.load %arg9[%c0_28, %c0_29, %c0_30] : memref<1x1x32xf32, #tpu.memory_space<vmem>>, vector<1x1x32xf32>
    %46 = vector.shape_cast %45 : vector<1x1x32xf32> to vector<1x32xf32>
    %cst_31 = arith.constant dense<0.000000e+00> : vector<8xf32>
    %47 = vector.multi_reduction <add>, %42, %cst_31 [1] : vector<8x32xf32> to vector<8xf32>
    %48 = vector.shape_cast %47 : vector<8xf32> to vector<8x1xf32>
    %cst_32 = arith.constant 3.200000e+01 : f32
    %49 = vector.broadcast %cst_32 : f32 to vector<8x1xf32>
    %50 = arith.divf %48, %49 : vector<8x1xf32>
    %51 = vector.broadcast %50 : vector<8x1xf32> to vector<8x32xf32>
    %52 = arith.subf %42, %51 : vector<8x32xf32>
    %53 = arith.mulf %52, %52 : vector<8x32xf32>
    %cst_33 = arith.constant dense<0.000000e+00> : vector<8xf32>
    %54 = vector.multi_reduction <add>, %53, %cst_33 [1] : vector<8x32xf32> to vector<8xf32>
    %55 = vector.shape_cast %54 : vector<8xf32> to vector<8x1xf32>
    %cst_34 = arith.constant 3.200000e+01 : f32
    %56 = vector.broadcast %cst_34 : f32 to vector<8x1xf32>
    %57 = arith.divf %55, %56 : vector<8x1xf32>
    %58 = vector.broadcast %50 : vector<8x1xf32> to vector<8x32xf32>
    %59 = arith.subf %42, %58 : vector<8x32xf32>
    %cst_35 = arith.constant 9.99999974E-6 : f32
    %60 = vector.broadcast %cst_35 : f32 to vector<8x1xf32>
    %61 = arith.addf %57, %60 : vector<8x1xf32>
    %62 = math.rsqrt %61 : vector<8x1xf32>
    %63 = vector.broadcast %62 : vector<8x1xf32> to vector<8x32xf32>
    %64 = arith.mulf %59, %63 : vector<8x32xf32>
    %65 = vector.broadcast %44 : vector<1x32xf32> to vector<8x32xf32>
    %66 = arith.mulf %64, %65 : vector<8x32xf32>
    %67 = vector.broadcast %46 : vector<1x32xf32> to vector<8x32xf32>
    %68 = arith.addf %66, %67 : vector<8x32xf32>
    %69 = arith.truncf %68 : vector<8x32xf32> to vector<8x32xbf16>
    %c0_36 = arith.constant 0 : index
    %c0_37 = arith.constant 0 : index
    %c0_38 = arith.constant 0 : index
    %70 = vector.load %arg12[%c0_36, %c0_37, %c0_38] : memref<1x32x64xbf16, #tpu.memory_space<vmem>>, vector<1x32x64xbf16>
    %71 = vector.shape_cast %70 : vector<1x32x64xbf16> to vector<32x64xbf16>
    %cst_39 = arith.constant dense<0.000000e+00> : vector<8x64xf32>
    %72 = tpu.matmul %69, %71, %cst_39 {dimension_numbers = #tpu.dot_dimension_numbers<[1], [0], [0], [1], [0, 0, 1, 1], [], []>} : vector<8x32xbf16>, vector<32x64xbf16>, vector<8x64xf32> -> vector<8x64xf32>
    %c0_40 = arith.constant 0 : index
    %c0_41 = arith.constant 0 : index
    %c0_42 = arith.constant 0 : index
    %73 = vector.load %arg13[%c0_40, %c0_41, %c0_42] : memref<1x1x64xf32, #tpu.memory_space<vmem>>, vector<1x1x64xf32>
    %74 = vector.shape_cast %73 : vector<1x1x64xf32> to vector<1x64xf32>
    %75 = vector.broadcast %74 : vector<1x64xf32> to vector<8x64xf32>
    %76 = arith.addf %72, %75 : vector<8x64xf32>
    %cst_43 = arith.constant 0.000000e+00 : f32
    %77 = vector.broadcast %cst_43 : f32 to vector<8x64xf32>
    %78 = arith.maximumf %76, %77 : vector<8x64xf32>
    %79 = arith.truncf %78 : vector<8x64xf32> to vector<8x64xbf16>
    %c0_44 = arith.constant 0 : index
    %c0_45 = arith.constant 0 : index
    %c0_46 = arith.constant 0 : index
    %80 = vector.load %arg14[%c0_44, %c0_45, %c0_46] : memref<1x64x32xbf16, #tpu.memory_space<vmem>>, vector<1x64x32xbf16>
    %81 = vector.shape_cast %80 : vector<1x64x32xbf16> to vector<64x32xbf16>
    %cst_47 = arith.constant dense<0.000000e+00> : vector<8x32xf32>
    %82 = tpu.matmul %79, %81, %cst_47 {dimension_numbers = #tpu.dot_dimension_numbers<[1], [0], [0], [1], [0, 0, 1, 1], [], []>} : vector<8x64xbf16>, vector<64x32xbf16>, vector<8x32xf32> -> vector<8x32xf32>
    %c0_48 = arith.constant 0 : index
    %c0_49 = arith.constant 0 : index
    %c0_50 = arith.constant 0 : index
    %83 = vector.load %arg15[%c0_48, %c0_49, %c0_50] : memref<1x1x32xf32, #tpu.memory_space<vmem>>, vector<1x1x32xf32>
    %84 = vector.shape_cast %83 : vector<1x1x32xf32> to vector<1x32xf32>
    %85 = vector.broadcast %84 : vector<1x32xf32> to vector<8x32xf32>
    %86 = arith.addf %82, %85 : vector<8x32xf32>
    %87 = arith.addf %86, %68 : vector<8x32xf32>
    %c0_51 = arith.constant 0 : index
    %c0_52 = arith.constant 0 : index
    %c0_53 = arith.constant 0 : index
    %88 = vector.load %arg10[%c0_51, %c0_52, %c0_53] : memref<1x1x32xf32, #tpu.memory_space<vmem>>, vector<1x1x32xf32>
    %89 = vector.shape_cast %88 : vector<1x1x32xf32> to vector<1x32xf32>
    %c0_54 = arith.constant 0 : index
    %c0_55 = arith.constant 0 : index
    %c0_56 = arith.constant 0 : index
    %90 = vector.load %arg11[%c0_54, %c0_55, %c0_56] : memref<1x1x32xf32, #tpu.memory_space<vmem>>, vector<1x1x32xf32>
    %91 = vector.shape_cast %90 : vector<1x1x32xf32> to vector<1x32xf32>
    %cst_57 = arith.constant dense<0.000000e+00> : vector<8xf32>
    %92 = vector.multi_reduction <add>, %87, %cst_57 [1] : vector<8x32xf32> to vector<8xf32>
    %93 = vector.shape_cast %92 : vector<8xf32> to vector<8x1xf32>
    %cst_58 = arith.constant 3.200000e+01 : f32
    %94 = vector.broadcast %cst_58 : f32 to vector<8x1xf32>
    %95 = arith.divf %93, %94 : vector<8x1xf32>
    %96 = vector.broadcast %95 : vector<8x1xf32> to vector<8x32xf32>
    %97 = arith.subf %87, %96 : vector<8x32xf32>
    %98 = arith.mulf %97, %97 : vector<8x32xf32>
    %cst_59 = arith.constant dense<0.000000e+00> : vector<8xf32>
    %99 = vector.multi_reduction <add>, %98, %cst_59 [1] : vector<8x32xf32> to vector<8xf32>
    %100 = vector.shape_cast %99 : vector<8xf32> to vector<8x1xf32>
    %cst_60 = arith.constant 3.200000e+01 : f32
    %101 = vector.broadcast %cst_60 : f32 to vector<8x1xf32>
    %102 = arith.divf %100, %101 : vector<8x1xf32>
    %103 = vector.broadcast %95 : vector<8x1xf32> to vector<8x32xf32>
    %104 = arith.subf %87, %103 : vector<8x32xf32>
    %cst_61 = arith.constant 9.99999974E-6 : f32
    %105 = vector.broadcast %cst_61 : f32 to vector<8x1xf32>
    %106 = arith.addf %102, %105 : vector<8x1xf32>
    %107 = math.rsqrt %106 : vector<8x1xf32>
    %108 = vector.broadcast %107 : vector<8x1xf32> to vector<8x32xf32>
    %109 = arith.mulf %104, %108 : vector<8x32xf32>
    %110 = vector.broadcast %89 : vector<1x32xf32> to vector<8x32xf32>
    %111 = arith.mulf %109, %110 : vector<8x32xf32>
    %112 = vector.broadcast %91 : vector<1x32xf32> to vector<8x32xf32>
    %113 = arith.addf %111, %112 : vector<8x32xf32>
    %114 = arith.index_cast %9 : i32 to index
    %c0_62 = arith.constant 0 : index
    %115 = vector.load %arg17[%114, %c0_62] : memref<8x32xf32, #tpu.memory_space<vmem>>, vector<8x32xf32>
    tpu.vector_store %arg17[%114, %c0_62], %113 {strides = array<i32>} : memref<8x32xf32, #tpu.memory_space<vmem>>, vector<8x32xf32>,
    %c1_i32 = arith.constant 1 : i32
    %116 = arith.cmpi eq, %arg1, %c1_i32 : i32
    %c0_i32_63 = arith.constant 0 : i32
    %117 = arith.cmpi eq, %arg2, %c0_i32_63 : i32
    %118 = arith.andi %116, %117 : i1
    %119 = arith.extui %118 : i1 to i32
    %c0_i32_64 = arith.constant 0 : i32
    %120 = arith.cmpi ne, %119, %c0_i32_64 : i32
    scf.if %120 {
      %c0_65 = arith.constant 0 : index
      %c0_66 = arith.constant 0 : index
      %121 = vector.load %arg17[%c0_65, %c0_66] : memref<8x32xf32, #tpu.memory_space<vmem>>, vector<8x32xf32>
      %c0_67 = arith.constant 0 : index
      %c0_68 = arith.constant 0 : index
      %c0_69 = arith.constant 0 : index
      %122 = vector.load %arg16[%c0_67, %c0_68, %c0_69] : memref<1x8x32xf32, #tpu.memory_space<vmem>>, vector<1x8x32xf32>
      %123 = vector.shape_cast %122 : vector<1x8x32xf32> to vector<8x32xf32>
      %124 = vector.shape_cast %121 : vector<8x32xf32> to vector<1x8x32xf32>
      tpu.vector_store %arg16[%c0_67, %c0_68, %c0_69], %124 {strides = array<i32>} : memref<1x8x32xf32, #tpu.memory_space<vmem>>, vector<1x8x32xf32>,
    } else {
    }
    return
  }
  func.func @transform_0(%arg0: i32, %arg1: i32, %arg2: i32) -> (i32, i32, i32) {
    %c0_i32 = arith.constant 0 : i32
    %c0_i32_0 = arith.constant 0 : i32
    %c0_i32_1 = arith.constant 0 : i32
    return %arg0, %c0_i32, %c0_i32_0 : i32, i32, i32
  }
  func.func @transform_1(%arg0: i32, %arg1: i32, %arg2: i32) -> (i32, i32, i32) {
    %c0_i32 = arith.constant 0 : i32
    %c0_i32_0 = arith.constant 0 : i32
    %c0_i32_1 = arith.constant 0 : i32
    return %arg0, %c0_i32, %c0_i32_0 : i32, i32, i32
  }
  func.func @transform_2(%arg0: i32, %arg1: i32, %arg2: i32) -> (i32, i32, i32) {
    %c0_i32 = arith.constant 0 : i32
    %c0_i32_0 = arith.constant 0 : i32
    %c0_i32_1 = arith.constant 0 : i32
    return %arg1, %c0_i32, %c0_i32_0 : i32, i32, i32
  }
  func.func @transform_3(%arg0: i32, %arg1: i32, %arg2: i32) -> (i32, i32, i32) {
    %c0_i32 = arith.constant 0 : i32
    %c0_i32_0 = arith.constant 0 : i32
    %c0_i32_1 = arith.constant 0 : i32
    return %arg1, %c0_i32, %c0_i32_0 : i32, i32, i32
  }
  func.func @transform_4(%arg0: i32, %arg1: i32, %arg2: i32) -> (i32, i32, i32) {
    %c0_i32 = arith.constant 0 : i32
    %c0_i32_0 = arith.constant 0 : i32
    %c0_i32_1 = arith.constant 0 : i32
    return %arg1, %c0_i32, %c0_i32_0 : i32, i32, i32
  }
  func.func @transform_5(%arg0: i32, %arg1: i32, %arg2: i32) -> (i32, i32, i32) {
    %c0_i32 = arith.constant 0 : i32
    %c0_i32_0 = arith.constant 0 : i32
    %c0_i32_1 = arith.constant 0 : i32
    return %arg1, %c0_i32, %c0_i32_0 : i32, i32, i32
  }
  func.func @transform_6(%arg0: i32, %arg1: i32, %arg2: i32) -> (i32, i32, i32) {
    %c0_i32 = arith.constant 0 : i32
    %c0_i32_0 = arith.constant 0 : i32
    %c0_i32_1 = arith.constant 0 : i32
    return %arg1, %c0_i32, %c0_i32_0 : i32, i32, i32
  }
  func.func @transform_7(%arg0: i32, %arg1: i32, %arg2: i32) -> (i32, i32, i32) {
    %c0_i32 = arith.constant 0 : i32
    %c0_i32_0 = arith.constant 0 : i32
    %c0_i32_1 = arith.constant 0 : i32
    return %arg1, %c0_i32, %c0_i32_0 : i32, i32, i32
  }
  func.func @transform_8(%arg0: i32, %arg1: i32, %arg2: i32) -> (i32, i32, i32) {
    %c0_i32 = arith.constant 0 : i32
    %c0_i32_0 = arith.constant 0 : i32
    %c0_i32_1 = arith.constant 0 : i32
    return %arg1, %c0_i32, %c0_i32_0 : i32, i32, i32
  }
  func.func @transform_9(%arg0: i32, %arg1: i32, %arg2: i32) -> (i32, i32, i32) {
    %c0_i32 = arith.constant 0 : i32
    %c0_i32_0 = arith.constant 0 : i32
    %c0_i32_1 = arith.constant 0 : i32
    return %arg1, %c0_i32, %c0_i32_0 : i32, i32, i32
  }
  func.func @transform_10(%arg0: i32, %arg1: i32, %arg2: i32) -> (i32, i32, i32) {
    %c0_i32 = arith.constant 0 : i32
    %c0_i32_0 = arith.constant 0 : i32
    %c0_i32_1 = arith.constant 0 : i32
    return %arg1, %c0_i32, %c0_i32_0 : i32, i32, i32
  }
  func.func @transform_11(%arg0: i32, %arg1: i32, %arg2: i32) -> (i32, i32, i32) {
    %c0_i32 = arith.constant 0 : i32
    %c0_i32_0 = arith.constant 0 : i32
    %c0_i32_1 = arith.constant 0 : i32
    return %arg1, %c0_i32, %c0_i32_0 : i32, i32, i32
  }
  func.func @transform_12(%arg0: i32, %arg1: i32, %arg2: i32) -> (i32, i32, i32) {
    %c0_i32 = arith.constant 0 : i32
    %c0_i32_0 = arith.constant 0 : i32
    %c0_i32_1 = arith.constant 0 : i32
    return %arg1, %c0_i32, %c0_i32_0 : i32, i32, i32
  }
  func.func @transform_13(%arg0: i32, %arg1: i32, %arg2: i32) -> (i32, i32, i32) {
    %c0_i32 = arith.constant 0 : i32
    %c0_i32_0 = arith.constant 0 : i32
    %c0_i32_1 = arith.constant 0 : i32
    return %arg0, %c0_i32, %c0_i32_0 : i32, i32, i32
  }
}

</mosaic_0001>

<bundles_post_ra>
// kernel: tpu_custom_call.1
= control target key start
LH: loop header
LB: loop body
LE: loop exit
PB: predicated region body
PF: predicated region fallthrough
CT: control target
= control target key end

     0   :  { %s2892_s0 = inlined_call_operand.vmem [shape: f32[2,8,32], index: 0, kind: input, shape index: {}]   ;;  %s2893_s1 = inlined_call_operand.vmem [shape: f32[2,1,8], index: 1, kind: input, shape index: {}]   ;;  %s2894_s2 = inlined_call_operand.vmem [shape: bf16[2,8,24], index: 2, kind: input, shape index: {}]   ;;  %s2895_s3 = inlined_call_operand.vmem [shape: bf16[2,32,32], index: 3, kind: input, shape index: {}]   ;;  %s2896_s4 = inlined_call_operand.vmem [shape: f32[2,1,32], index: 4, kind: input, shape index: {}]   ;;  %s2897_s5 = inlined_call_operand.vmem [shape: f32[2,1,32], index: 5, kind: input, shape index: {}]   ;;  %s2898_s6 = inlined_call_operand.vmem [shape: f32[2,1,32], index: 6, kind: input, shape index: {}]   ;;  %s2899_s7 = inlined_call_operand.vmem [shape: f32[2,1,32], index: 7, kind: input, shape index: {}]   ;;  %s2900_s8 = inlined_call_operand.vmem [shape: f32[2,1,32], index: 8, kind: input, shape index: {}]   ;;  %s2901_s9 = inlined_call_operand.vmem [shape: bf16[2,32,64], index: 9, kind: input, shape index: {}]   ;;  %s2902_s10 = inlined_call_operand.vmem [shape: f32[2,1,64], index: 10, kind: input, shape index: {}]   ;;  %s2903_s11 = inlined_call_operand.vmem [shape: bf16[2,64,32], index: 11, kind: input, shape index: {}]   ;;  %s2904_s12 = inlined_call_operand.vmem [shape: f32[2,1,32], index: 12, kind: input, shape index: {}]   ;;  %s2905_s13 = inlined_call_operand.hbm [shape: f32[2,8,32], index: 13, kind: output, shape index: {}]  }
   0x1   :  { %2922 = sst [smem:[#allocation23_spill]] %s2892_s0 }
   0x2   :  { %2923 = sst [smem:[#allocation24_spill]] %s2894_s2 }
   0x3   :  { %2924 = sst [smem:[#allocation25_spill]] %s2895_s3 }
   0x4   :  { %2925 = sst [smem:[#allocation26_spill]] %s2899_s7 }
   0x5   :  { %2926 = sst [smem:[#allocation27_spill]] %s2903_s11 }
   0x6   :  { %2927 = sst [smem:[#allocation28_spill]] %s2904_s12 }
   0x7   :  { %2928 = sst [smem:[#allocation29_spill]] %s2905_s13 }
   0x8   :  { %18 = vsyncpa [#allocation7], 0 }
   0x9   :  { %20 = vsyncpa [#allocation7 + $0x1], 0  ;;  %s2482_s25 = smov 0   ;;  %s2484_s26 = smov 0  }
   0xa   :  { %s2486_s27 = smov 0   ;;  %s2488_s28 = smov 0  }
   0xb   :  { %s2490_s29 = smov 0   ;;  %s2492_s30 = smov 0  }
   0xc   :  { %s2494_s14 = smov 0   ;;  %s2496_s15 = smov 0  }
   0xd LB: > { %2929 = sst [smem:[#allocation9_spill]] %s2371_s25  ;;  %s2017_s16 = sadd.s32 4294967295, %s2399_s15   ;;  %s2399_s15 = sphi %s2496_s15, %s26_s15   ;;  %s2395_s14 = sphi %s2494_s14, %s2975_s14   ;;  %s2391_s30 = sphi %s2492_s30, %s2974_s30   ;;  %s2387_s29 = sphi %s2490_s29, %s2973_s29   ;;  %s2383_s28 = sphi %s2488_s28, %s2972_s28   ;;  %s2379_s27 = sphi %s2486_s27, %s2971_s27   ;;  %s2375_s26 = sphi %s2484_s26, %s2970_s26   ;;  %s2371_s25 = sphi %s2482_s25, %s2969_s25  }
   0xe   : > { %2930 = sst [smem:[#allocation10_spill]] %s2375_s26  ;;  %s2018_s17 = sadd.s32 4294967294, %s2399_s15  }
   0xf   : > { %2931 = sst [smem:[#allocation11_spill]] %s2379_s27  ;;  %s41_s18 = sadd.s32 1, %s2391_s30 }
  0x10   : > { %2932 = sst [smem:[#allocation12_spill]] %s2383_s28  ;;  %p43_p0 = scmp.ge.s32.totalorder %s41_s18, 2 }
  0x11   : > { %2933 = sst [smem:[#allocation13_spill]] %s2387_s29  ;;  %s45_s19 = sadd.s32 1, %s2395_s14 }
  0x12   : > { %2934 = sst [smem:[#allocation14_spill]] %s2391_s30  ;;  %p400_p1 = scmp.ne.s32.totalorder %s2379_s27, %s2375_s26 }
  0x13   : > { %2935 = sst [smem:[#allocation15_spill]] %s2395_s14  ;;  %p401_p2 = scmp.eq.s32.totalorder %s2017_s16, 3 }
  0x14   : > { %2936 = sst [smem:[#allocation16_spill]] %s2399_s15  ;;  %s2977_s18 = smov (%p43_p0, %s41_s18), 0 }
  0x15   : > { %2937 = sst [smem:[#allocation17_spill]] %s2977_s18  ;;  %s2979_s19 = smov (!%p43_p0, %s45_s19), %s2395_s14 }
  0x16   : > { %p2531_p3 = por %p401_p2, %p400_p1  ;;  %p406_p4 = scmp.ne.s32.totalorder %s2375_s26, %s2371_s25 }
  0x17   : > { %p47_p5 = scmp.ge.s32.totalorder %s2979_s19, 2  ;;  %p407_p6 = scmp.eq.s32.totalorder %s2018_s17, 3 }
  0x18   : > { %s2938_s20 = scalar_select %p2531_p3, 1, 0 }
  0x19   : > { %p2021_p7 = scmp.ge.s32.totalorder %s2399_s15, 1  ;;  %p511_p8 = scmp.lt.s32.totalorder %s2399_s15, 5 }
  0x1a   : > { %2939 = sst [smem:[#allocation18_spill]] %s2938_s20  ;;  %s2981_s19 = smov (%p47_p5, %s2979_s19), 0 }
  0x1b   : > { %2940 = sst [smem:[#allocation19_spill]] %s2981_s19  ;;  %p2541_p9 = por %p407_p6, %p406_p4 }
  0x1c   : > { %p512_p10 = pnand %p2021_p7, %p511_p8  ;;  %s387_s22 = ssub.s32 %s2395_s14, %s2981_s19 }
  0x1d   : > { %s2941_s21 = scalar_select %p2541_p9, 1, 0 }
  0x1e   : > { %s390_s23 = sadd.s32 1, %s2379_s27  ;;  %p388_p11 = scmp.eq.s32.totalorder %s387_s22, 0 }
  0x1f   : > { %2942 = sst [smem:[#allocation20_spill]] %s2941_s21  ;;  %515 = sbr.rel (%p512_p10) target bundleno = 2762 (0xaca), region = 72 }
  0x20   : > { %s2549_s24 = scalar_select %p388_p11, %s2379_s27, %s390_s23  }
  0x22   : > { %2943 = sst [smem:[#allocation21_spill]] %s2549_s24 }
  0x26   : > { %s2907_s16 = sand.u32 1, %s2375_s26   ;;  %p597_p12 = scmp.lt.s32.totalorder %s2387_s29, 1 }
  0x27   : > { %s2555_s17 = sshll.u32 %s2907_s16, 3  ;;  %p604_p13 = scmp.lt.s32.totalorder %s2383_s28, 1 }
  0x28   : > { %p645_p0 = scmp.eq.s32.totalorder %s2383_s28, 0  ;;  %s2944_s0 = sld [smem:[#allocation23_spill]] }
  0x29   : > { %s2560_s19 = scalar_select %p597_p12, %s2387_s29, 1 }
  0x2a   : > { %s2563_s22 = scalar_select %p604_p13, %s2383_s28, 1 }
  0x2b   : > { %s2023_s23 = sshll.u32 %s2560_s19, 3  ;;  %s2945_s2 = sld [smem:[#allocation24_spill]]  ;;  %vm652_vm0 = vcmask (%p645_p0), 261120  }
  0x2c   : > { %s2024_s21 = sshll.u32 %s2563_s22, 2  ;;  %s2074_s20 = sshll.u32 %s2563_s22, 4 }
  0x2d   : > { %s2946_s3 = sld [smem:[#allocation25_spill]]  ;;  %s627_s29 = scalar_lea.vmem %s2900_s8, %s2563_s22 }
  0x2e   : > { %s600_s27 = scalar_lea.vmem %s2944_s0, %s2023_s23  ;;  %s2606_s11 = scalar_lea.vmem %s2901_s9, %s2074_s20 }
  0x2f   : > { %s635_s16 = scalar_lea.vmem %s2902_s10, %s2563_s22  ;;  %s2076_s30 = sshll.u32 %s2563_s22, 5  ;;  %v651_v0 = vld [vmem:[%s600_s27] sm:$0xff] (%p645_p0) }
  0x30   : > { %s2949_s0 = sld [smem:[#allocation28_spill]]  ;;  %653 = vst.msk [vmem:[#allocation2] sm:$0xff] (%p645_p0), %vm652_vm0, %v651_v0 }
  0x31   : > { %s607_s13 = scalar_lea.vmem %s2945_s2, %s2024_s21  ;;  %s2950_s21 = sld [smem:[#allocation27_spill]] }
  0x32   : > { %s596_s2 = scalar_lea.vmem [#allocation6], %s2555_s17  ;;  %650 = sbr.rel (!%p645_p0) target bundleno = 57 (0x39), region = 76 }
  0x33   : > { %s2581_s28 = scalar_lea.vmem %s2946_s3, %s2074_s20 }
  0x34   : > { %2947 = sst [smem:[#allocation22_spill]] %s2581_s28 }
  0x36   : > { %s643_s18 = scalar_lea.vmem %s2949_s0, %s2563_s22 }
  0x37   : > { %s2620_s7 = scalar_lea.vmem %s2950_s21, %s2076_s30 }
  0x39 PF: > { %v2625_v1 = vld [vmem:[#allocation2] sm:$0xff]  ;;  %vm814_vm1 = vcmask 1043456   ;;  %s2401_s3 = smov 104   ;;  %s2402_s0 = smov 120   ;;  %v2404_v4 = vmov 1983009808   ;;  %v673_v6 = vlaneseq }
  0x3a   : > { %665 = vrot.lane.b32.xlu1 %v2625_v1, %s2401_s3  ;;  %659 = vrot.lane.b32.xlu0 %v2625_v1, %s2402_s0  ;;  %v806_v2 = vld [vmem:[%s607_s13] sm:$0xf]  ;;  %s2403_s27 = smov 112   ;;  %v671_v5 = vunpack.c.l.s4 %v2404_v4  ;;  %v2405_v7 = vmov 1934713408   ;;  %vm807_vm2 = vcmask 64512   ;;  %s2952_s20 = scalar_lea.vmem %s2893_s1, %s2560_s19 }
  0x3b   : > { %2195 = vmatprep.subr.msk.bf16.mxu0 %vm814_vm1, %v806_v2  ;;  %v816_v3 = vsel %vm814_vm1, %v806_v2, 0  ;;  %v703_v8 = vunpack.c.l.s4 %v2405_v7  ;;  %v674_v10 = vshrl.u32 %v673_v6, 7  ;;  %v2406_v55 = vmov 0.0   ;;  %s2953_s19 = sld [smem:[#allocation22_spill]]  ;;  %s2408_s30 = smov 16  }
  0x3c   : > { %2114 = vmatpush3.bf16.msra.mxu0 %v816_v3  ;;  %v672_v9 = vunpack.c.0.s8 %v671_v5  ;;  %2131 = vmatprep.subr.bf16.mxu1 %v2406_v55  ;;  %vm871_vm3 = vcmask 60416   ;;  %vm2407_vm4 = vmmov 0   ;;  %s2409_s21 = smov 8   ;;  %s2410_s12 = smov 24   ;;  %vm1511_vm5 = vcmask 130048  }
  0x3d   : > { %v704_v13 = vunpack.c.0.s8 %v703_v8  ;;  %2119 = vmatprep.subr.bf16.mxu0 %v2406_v55  ;;  %2133 = vmatprep.mubr.msk.bf16.mxu1 %vm2407_vm4, %v2406_v55  ;;  %vm1513_vm6 = vcmask 195584   ;;  %vm1539_vm7 = vcmask 261120   ;;  %s2954_s23 = scalar_lea.vmem %s2896_s4, %s2563_s22  ;;  %s2955_s15 = scalar_lea.vmem %s2897_s5, %s2563_s22  ;;  %vm1724_vm8 = vcmask 523264  }
  0x3e   : > { %662 = vrot.lane.b32.xlu0 %v2625_v1, %s2403_s27  ;;  %v2634_v14 = vsub.s32 %v672_v9, %v674_v10 }
  0x3f   : > { %v2638_v20 = vsub.s32 %v704_v13, %v674_v10 }
  0xac   : > { %v666_v11 = vpop.permute.xlu1 %665  ;;  %v660_v12 = vpop.permute.xlu0 %659 }
  0xad   : > { %v684_v15 = vcombine.low %v660_v12, %v666_v11  ;;  %v685_v16 = vcombine.high %v660_v12, %v666_v11 }
  0xaf   : > { %v692_v21 = vrot.slane %v684_v15, %v2634_v14  ;;  %v699_v22 = vrot.slane %v685_v16, %v2634_v14 }
  0xb0   : > { %v663_v17 = vpop.permute.xlu0 %662 }
  0xb1   : > { %v668_v18 = vcombine.low %v2625_v1, %v663_v17  ;;  %v669_v19 = vcombine.high %v2625_v1, %v663_v17 }
  0xb3   : > { %v676_v23 = vrot.slane %v668_v18, %v2634_v14  ;;  %v683_v24 = vrot.slane %v669_v19, %v2634_v14  ;;  %v2040_v18 = vld [vmem:[%s2952_s20] ss:$0 sm:$0xff] }
  0xb5   : > { %v700_v25 = vcombine.low %v676_v23, %v692_v21  ;;  %v701_v26 = vcombine.high %v676_v23, %v692_v21  ;;  %v716_v27 = vcombine.low %v683_v24, %v699_v22  ;;  %v717_v28 = vcombine.high %v683_v24, %v699_v22 }
  0xb7   : > { %v708_v29 = vrot.slane %v700_v25, %v2638_v20  ;;  %v715_v30 = vrot.slane %v701_v26, %v2638_v20  ;;  %v724_v31 = vrot.slane %v716_v27, %v2638_v20  ;;  %v731_v32 = vrot.slane %v717_v28, %v2638_v20 }
  0xb9   : > { %v736_v33 = vcombine.low %v708_v29, %v715_v30  ;;  %v2032_v34 = vcombine.high %v708_v29, %v715_v30  ;;  %v752_v35 = vcombine.low %v724_v31, %v731_v32  ;;  %v2033_v36 = vcombine.high %v724_v31, %v731_v32 }
  0xbb   : > { %v743_v37 = vrot.slane %v736_v33, %v2634_v14  ;;  %v751_v38 = vrot.slane %v2032_v34, %v2634_v14  ;;  %v759_v39 = vrot.slane %v752_v35, %v2634_v14  ;;  %v767_v40 = vrot.slane %v2033_v36, %v2634_v14 }
  0xbd   : > { %v768_v41 = vcombine.low %v743_v37, %v751_v38  ;;  %v769_v42 = vcombine.high %v743_v37, %v751_v38  ;;  %v784_v43 = vcombine.low %v759_v39, %v767_v40  ;;  %v785_v44 = vcombine.high %v759_v39, %v767_v40 }
  0xbf   : > { %v776_v45 = vrot.slane %v768_v41, %v2638_v20  ;;  %v792_v46 = vrot.slane %v784_v43, %v2638_v20  ;;  %v783_v47 = vrot.slane %v769_v42, %v2638_v20  ;;  %v799_v48 = vrot.slane %v785_v44, %v2638_v20 }
  0xc1   : > { %v800_v49 = vcombine.low %v776_v45, %v792_v46  ;;  %v801_v50 = vcombine.high %v776_v45, %v792_v46  ;;  %v802_v51 = vcombine.low %v783_v47, %v799_v48  ;;  %v803_v52 = vcombine.high %v783_v47, %v799_v48 }
  0xc3   : > { %v804_v53 = vpack.c.bf16 %v801_v50, %v800_v49  ;;  %v805_v54 = vpack.c.bf16 %v803_v52, %v802_v51 }
  0xc5   : > { %2115 = vmatprep.mubr.msk.bf16.mxu0 %vm807_vm2, %v804_v53 }
  0xc6   : > { %2116 = vmatmul.mubr.msk.bf16.vlgmr.msra.gmra.mrb[0].mxu0 %vm807_vm2, %v805_v54 }
  0xc7   : > { %2121 = vmatprep.mubr.msk.bf16.mxu0 %vm2407_vm4, %v2406_v55 }
 0x199   : > { %v2117_v56 = vpop.f32.mrb[0].mxu0 }
 0x19a   : > { %v2660_v57 = vpack.c.bf16 %v2117_v56, %v2117_v56  ;;  %v852_v58 = vpop.f32.mrb[1].mxu0 }
 0x19b   : > { %v2662_v59 = vpack.c.bf16 %v852_v58, %v852_v58  ;;  %v2118_v60 = vpop.f32.mrb[2].mxu0 }
 0x19c   : > { %874 = vst.msk [vmem:[#allocation3 + $0x8] sm:$0xf] %vm871_vm3, %v2660_v57  ;;  %v2666_v61 = vpack.c.bf16 %v2118_v60, %v2118_v60  ;;  %v855_v62 = vpop.f32.mrb[3].mxu0 }
 0x19d   : > { %872 = vst.msk [vmem:[#allocation3] sm:$0xf] %vm871_vm3, %v2662_v59  ;;  %v2670_v63 = vpack.c.bf16 %v855_v62, %v855_v62  ;;  %888 = vrot.lane.b32.xlu1 %v2662_v59, %s2402_s0 }
 0x19e   : > { %875 = vst.msk [vmem:[#allocation3 + $0xc] sm:$0xf] %vm871_vm3, %v2666_v61 }
 0x19f   : > { %873 = vst.msk [vmem:[#allocation3 + $0x4] sm:$0xf] %vm871_vm3, %v2670_v63  ;;  %890 = vrot.lane.b32.xlu0 %v2670_v63, %s2402_s0 }
 0x1a1   : > { %892 = vrot.lane.b32.xlu1 %v2660_v57, %s2402_s0 }
 0x1a3   : > { %894 = vrot.lane.b32.xlu0 %v2666_v61, %s2402_s0  ;;  %v927_v12 = vld [vmem:[#allocation3 + $0x8] sm:$0xf]  ;;  %s2956_s0 = scalar_lea.vmem %s2898_s6, %s2563_s22 }
 0x1a4   : > { %v925_v10 = vld [vmem:[#allocation3] sm:$0xf] }
 0x1a5   : > { %v928_v17 = vld [vmem:[#allocation3 + $0xc] sm:$0xf] }
 0x1a6   : > { %v926_v15 = vld [vmem:[#allocation3 + $0x4] sm:$0xf] }
 0x20f   : > { %v889_v0 = vpop.permute.xlu1 %888 }
 0x210   : > { %900 = vst.msk [vmem:[#allocation4] sm:$0xf] %vm871_vm3, %v889_v0 }
 0x211   : > { %v891_v2 = vpop.permute.xlu0 %890 }
 0x212   : > { %901 = vst.msk [vmem:[#allocation4 + $0x4] sm:$0xf] %vm871_vm3, %v891_v2 }
 0x213   : > { %v893_v3 = vpop.permute.xlu1 %892 }
 0x214   : > { %902 = vst.msk [vmem:[#allocation4 + $0x8] sm:$0xf] %vm871_vm3, %v893_v3 }
 0x215   : > { %v895_v4 = vpop.permute.xlu0 %894 }
 0x216   : > { %903 = vst.msk [vmem:[#allocation4 + $0xc] sm:$0xf] %vm871_vm3, %v895_v4 }
 0x217   : > { %v929_v5 = vld [vmem:[#allocation4] sm:$0xf] }
 0x218   : > { %v945_v6 = vsel %vm807_vm2, %v929_v5, 0 }
 0x219   : > { %2120 = vmatpush3.bf16.xpose.msra.mxu0 %v945_v6  ;;  %v930_v9 = vld [vmem:[#allocation4 + $0x4] sm:$0xf] }
 0x21a   : > { %2125 = vmatprep.subr.bf16.mxu0 %v2406_v55  ;;  %v991_v11 = vsel %vm807_vm2, %v930_v9, 0 }
 0x21b   : > { %v931_v7 = vld [vmem:[#allocation4 + $0x8] sm:$0xf] }
 0x21c   : > { %v1037_v8 = vsel %vm807_vm2, %v931_v7, 0 }
 0x21d   : > { %2132 = vmatpush3.bf16.xpose.msra.mxu1 %v1037_v8  ;;  %v932_v13 = vld [vmem:[#allocation4 + $0xc] sm:$0xf] }
 0x21e   : > { %2143 = vmatprep.subr.bf16.mxu1 %v2406_v55  ;;  %v1083_v16 = vsel %vm807_vm2, %v932_v13, 0 }
 0x220   : > { %2122 = vmatmul.mubr.msk.bf16.vlgmr.msra.gmra.mrb[4].mxu0 %vm807_vm2, %v925_v10 }
 0x221   : > { %2126 = vmatpush3.bf16.xpose.msra.mxu0 %v991_v11  ;;  %2127 = vmatprep.mubr.msk.bf16.mxu0 %vm2407_vm4, %v2406_v55 }
 0x222   : > { %2137 = vmatprep.subr.bf16.mxu0 %v2406_v55 }
 0x224   : > { %2134 = vmatmul.mubr.msk.bf16.vlgmr.msra.gmra.mrb[0].mxu1 %vm807_vm2, %v927_v12 }
 0x225   : > { %2145 = vmatprep.mubr.msk.bf16.mxu1 %vm2407_vm4, %v2406_v55 }
 0x228   : > { %2128 = vmatmul.mubr.msk.bf16.vlgmr.msra.gmra.mrb[8].mxu0 %vm807_vm2, %v926_v15 }
 0x229   : > { %2138 = vmatpush3.bf16.xpose.msra.mxu0 %v1083_v16  ;;  %2139 = vmatprep.mubr.msk.bf16.mxu0 %vm2407_vm4, %v2406_v55 }
 0x22a   : > { %2149 = vmatprep.subr.bf16.mxu0 %v2406_v55 }
 0x230   : > { %2140 = vmatmul.mubr.msk.bf16.vlgmr.msra.gmra.mrb[12].mxu0 %vm807_vm2, %v928_v17 }
 0x231   : > { %2151 = vmatprep.mubr.msk.bf16.mxu0 %vm2407_vm4, %v2406_v55 }
 0x2f3   : > { %v981_v19 = vpop.f32.mrb[4].mxu0 }
 0x2f4   : > { %v982_v21 = vadd.f32 %v2040_v18, %v981_v19  ;;  %v2123_v22 = vpop.f32.mrb[5].mxu0 }
 0x2f5   : > { %v984_v23 = vpop.f32.mrb[6].mxu0 }
 0x2f6   : > { %v2124_v24 = vpop.f32.mrb[7].mxu0  ;;  %v1125_v25 = vsel %vm807_vm2, %v982_v21, -inf }
 0x2f7   : > { %v1073_v26 = vpop.f32.mrb[0].mxu1  ;;  %1126 = vmax.xlane.f32.xlu1 %v1125_v25 }
 0x2f8   : > { %v2135_v27 = vpop.f32.mrb[1].mxu1  ;;  %v1074_v34 = vadd.f32 %v2040_v18, %v1073_v26 }
 0x2f9   : > { %v1076_v28 = vpop.f32.mrb[2].mxu1 }
 0x2fa   : > { %v2136_v29 = vpop.f32.mrb[3].mxu1  ;;  %v1131_v37 = vsel %vm807_vm2, %v1074_v34, -inf }
 0x2fb   : > { %v1027_v30 = vpop.f32.mrb[8].mxu0 }
 0x2fc   : > { %v1028_v31 = vadd.f32 %v2040_v18, %v1027_v30  ;;  %v2129_v32 = vpop.f32.mrb[9].mxu0 }
 0x2fd   : > { %v1030_v33 = vpop.f32.mrb[10].mxu0 }
 0x2fe   : > { %v2130_v35 = vpop.f32.mrb[11].mxu0  ;;  %v1128_v36 = vsel %vm807_vm2, %v1028_v31, -inf }
 0x2ff   : > { %1129 = vmax.xlane.f32.xlu0 %v1128_v36 }
 0x303   : > { %1132 = vmax.xlane.f32.xlu0 %v1131_v37  ;;  %v1119_v38 = vpop.f32.mrb[12].mxu0 }
 0x304   : > { %v1120_v39 = vadd.f32 %v2040_v18, %v1119_v38  ;;  %v2141_v40 = vpop.f32.mrb[13].mxu0 }
 0x305   : > { %v1122_v41 = vpop.f32.mrb[14].mxu0 }
 0x306   : > { %v2142_v42 = vpop.f32.mrb[15].mxu0  ;;  %v1134_v43 = vsel %vm807_vm2, %v1120_v39, -inf }
 0x307   : > { %1135 = vmax.xlane.f32.xlu1 %v1134_v43 }
 0x318   : > { %906 = vrot.lane.b32.xlu1 %v2670_v63, %s2403_s27 }
 0x319   : > { %904 = vrot.lane.b32.xlu0 %v2662_v59, %s2403_s27 }
 0x384   : > { %v1127_v44 = vpop.xlane.xlu1 %1126 }
 0x385   : > { %v1137_v47 = vsub.f32 %v982_v21, %v1127_v44 }
 0x387   : > { %v1141_v51 = vmul.f32 1.442695, %v1137_v47 }
 0x38c   : > { %v1130_v45 = vpop.xlane.xlu0 %1129 }
 0x38d   : > { %v1138_v46 = vsub.f32 %v1028_v31, %v1130_v45 }
 0x38f   : > { %v1143_v48 = vmul.f32 1.442695, %v1138_v46 }
 0x390   : > { %v1133_v49 = vpop.xlane.xlu0 %1132 }
 0x391   : > { %2285 = vpow2.f32 %v1143_v48  ;;  %v1139_v50 = vsub.f32 %v1074_v34, %v1133_v49 }
 0x393   : > { %v1145_v52 = vmul.f32 1.442695, %v1139_v50 }
 0x394   : > { %v905_v53 = vpop.permute.xlu0 %904  ;;  %v1136_v54 = vpop.xlane.xlu1 %1135 }
 0x395   : > { %2287 = vpow2.f32 %v1145_v52  ;;  %916 = vst.msk [vmem:[#allocation5] sm:$0xf] %vm871_vm3, %v905_v53  ;;  %v1140_v56 = vsub.f32 %v1120_v39, %v1136_v54 }
 0x396   : > { %2289 = vpow2.f32 %v1141_v51 }
 0x397   : > { %v1147_v58 = vmul.f32 1.442695, %v1140_v56 }
 0x398   : > { %v907_v60 = vpop.permute.xlu1 %906 }
 0x399   : > { %2291 = vpow2.f32 %v1147_v58  ;;  %917 = vst.msk [vmem:[#allocation5 + $0x4] sm:$0xf] %vm871_vm3, %v907_v60 }
 0x39b   : > { %v2286_v59 = vpop.eup %2285 }
 0x39c   : > { %v1152_v62 = vsel %vm807_vm2, %v2286_v59, 0.0  ;;  %v1173_v63 = vld [vmem:[#allocation5] sm:$0xf] }
 0x39d   : > { %1153 = vadd.xlane.f32.xlu1 %v1152_v62  ;;  %v1182_v0 = vsel %vm814_vm1, %v1173_v63, 0  ;;  %v2277_v63 = vld [vmem:[%s2953_s19] sm:$0xff]  }
 0x39e   : > { %2144 = vmatpush3.bf16.msra.mxu1 %v1182_v0 }
 0x39f   : > { %v2288_v2 = vpop.eup %2287  ;;  %2155 = vmatprep.subr.bf16.mxu1 %v2406_v55 }
 0x3a0   : > { %v1155_v3 = vsel %vm807_vm2, %v2288_v2, 0.0  ;;  %v1174_v4 = vld [vmem:[#allocation5 + $0x4] sm:$0xf]  ;;  %v2290_v5 = vpop.eup %2289 }
 0x3a1   : > { %1156 = vadd.xlane.f32.xlu0 %v1155_v3  ;;  %v1228_v6 = vsel %vm814_vm1, %v1174_v4, 0  ;;  %v1149_v8 = vsel %vm807_vm2, %v2290_v5, 0.0 }
 0x3a2   : > { %2150 = vmatpush3.bf16.msra.mxu0 %v1228_v6 }
 0x3a3   : > { %v2292_v7 = vpop.eup %2291  ;;  %2161 = vmatprep.subr.bf16.mxu0 %v2406_v55 }
 0x3a4   : > { %v1158_v9 = vsel %vm807_vm2, %v2292_v7, 0.0 }
 0x3a5   : > { %1150 = vadd.xlane.f32.xlu0 %v1149_v8  ;;  %1159 = vadd.xlane.f32.xlu1 %v1158_v9  ;;  %v2278_v9 = vld [vmem:[%s2953_s19 + $0x8] sm:$0xff]  }
 0x3b6   : > { %908 = vrot.lane.b32.xlu1 %v2660_v57, %s2403_s27 }
 0x3bb   : > { %910 = vrot.lane.b32.xlu0 %v2666_v61, %s2403_s27 }
 0x42a   : > { %v1154_v10 = vpop.xlane.xlu1 %1153 }
 0x42b   : > { %2293 = vrcp.f32 %v1154_v10 }
 0x42e   : > { %v1157_v11 = vpop.xlane.xlu0 %1156 }
 0x432   : > { %v1151_v12 = vpop.xlane.xlu0 %1150  ;;  %v1160_v13 = vpop.xlane.xlu1 %1159 }
 0x433   : > { %2295 = vrcp.f32 %v1151_v12 }
 0x434   : > { %2297 = vrcp.f32 %v1160_v13 }
 0x435   : > { %v2294_v15 = vpop.eup %2293  ;;  %2299 = vrcp.f32 %v1157_v11 }
 0x436   : > { %v1166_v16 = vmul.f32 %v2294_v15, %v2286_v59  ;;  %v911_v17 = vpop.permute.xlu0 %910  ;;  %v909_v18 = vpop.permute.xlu1 %908 }
 0x437   : > { %919 = vst.msk [vmem:[#allocation5 + $0xc] sm:$0xf] %vm871_vm3, %v911_v17  ;;  %918 = vst.msk [vmem:[#allocation5 + $0x8] sm:$0xf] %vm871_vm3, %v909_v18 }
 0x438   : > { %v1170_v57 = vpack.c.bf16 %v1166_v16, %v1166_v16 }
 0x43a   : > { %2152 = vmatmul.mubr.msk.bf16.vlgmr.msra.gmra.mrb[16].mxu0 %vm807_vm2, %v1170_v57 }
 0x43b   : > { %2163 = vmatprep.mubr.msk.bf16.mxu0 %vm2407_vm4, %v2406_v55 }
 0x43d   : > { %v2296_v61 = vpop.eup %2295 }
 0x43e   : > { %v2298_v19 = vpop.eup %2297  ;;  %v1165_v21 = vmul.f32 %v2296_v61, %v2290_v5  ;;  %v1176_v22 = vld [vmem:[#allocation5 + $0xc] sm:$0xf]  ;;  %v1175_v25 = vld [vmem:[#allocation5 + $0x8] sm:$0xf] }
 0x43f   : > { %v1168_v23 = vmul.f32 %v2298_v19, %v2292_v7  ;;  %v1320_v24 = vsel %vm814_vm1, %v1176_v22, 0  ;;  %v2300_v27 = vpop.eup %2299  ;;  %v1274_v29 = vsel %vm814_vm1, %v1175_v25, 0 }
 0x440   : > { %2162 = vmatpush3.bf16.msra.mxu0 %v1320_v24  ;;  %v1169_v26 = vpack.c.bf16 %v1165_v21, %v1165_v21  ;;  %v1167_v30 = vmul.f32 %v2300_v27, %v2288_v2 }
 0x441   : > { %v1172_v28 = vpack.c.bf16 %v1168_v23, %v1168_v23  ;;  %2175 = vmatprep.subr.bf16.mxu0 %v2406_v55 }
 0x442   : > { %2146 = vmatmul.mubr.msk.bf16.vlgmr.msra.gmra.mrb[4].mxu1 %vm807_vm2, %v1169_v26  ;;  %v1171_v31 = vpack.c.bf16 %v1167_v30, %v1167_v30 }
 0x443   : > { %2156 = vmatpush3.bf16.msra.mxu1 %v1274_v29  ;;  %2164 = vmatmul.mubr.msk.bf16.vlgmr.msra.gmra.mrb[20].mxu0 %vm807_vm2, %v1172_v28 }
 0x444   : > { %2157 = vmatprep.mubr.msk.bf16.mxu1 %vm2407_vm4, %v2406_v55  ;;  %2167 = vmatprep.subr.bf16.mxu1 %v2406_v55 }
 0x445   : > { %2179 = vmatprep.mubr.msk.bf16.mxu0 %vm2407_vm4, %v2406_v55 }
 0x44a   : > { %2158 = vmatmul.mubr.msk.bf16.vlgmr.msra.gmra.mrb[8].mxu1 %vm807_vm2, %v1171_v31  ;;  %v2051_v31 = vld [vmem:[%s2954_s23] ss:$0 sm:$0xff] }
 0x44b   : > { %2171 = vmatprep.mubr.msk.bf16.mxu1 %vm2407_vm4, %v2406_v55  ;;  %2168 = vmatpush3.bf16.msra.mxu1 %v2277_v63 }
 0x44c   : > { %2169 = vmatprep.subr.bf16.mxu1 %v2406_v55 }
 0x44f   : > { %2170 = vmatpush3.bf16.msra.mxu1 %v2278_v9 }
 0x450   : > { %2183 = vmatprep.subr.bf16.mxu1 %v2406_v55 }
 0x50d   : > { %v1264_v32 = vpop.f32.mrb[16].mxu0 }
 0x50e   : > { %v2153_v33 = vpop.f32.mrb[17].mxu0 }
 0x50f   : > { %v1267_v34 = vpop.f32.mrb[18].mxu0 }
 0x510   : > { %v2154_v35 = vpop.f32.mrb[19].mxu0 }
 0x515   : > { %v1218_v36 = vpop.f32.mrb[4].mxu1 }
 0x516   : > { %v2147_v37 = vpop.f32.mrb[5].mxu1  ;;  %v1356_v38 = vpop.f32.mrb[20].mxu0 }
 0x517   : > { %v1378_v39 = vcombine.low %v1264_v32, %v1356_v38  ;;  %v1379_v40 = vcombine.high %v1264_v32, %v1356_v38  ;;  %v1221_v41 = vpop.f32.mrb[6].mxu1  ;;  %v2165_v42 = vpop.f32.mrb[21].mxu0 }
 0x518   : > { %v2148_v43 = vpop.f32.mrb[7].mxu1  ;;  %v1359_v44 = vpop.f32.mrb[22].mxu0 }
 0x519   : > { %v2166_v45 = vpop.f32.mrb[23].mxu0  ;;  %v1386_v51 = vrot.slane %v1378_v39, %v2634_v14  ;;  %v1393_v52 = vrot.slane %v1379_v40, %v2634_v14  ;;  %v2279_v44 = vld [vmem:[%s2606_s11] sm:$0xff]  }
 0x51a   : > { %2176 = vmatpush3.bf16.msra.mxu0 %v2279_v44  ;;  %v2280_v45 = vld [vmem:[%s2606_s11 + $0x8] sm:$0xff]  }
 0x51b   : > { %2177 = vmatprep.subr.bf16.mxu0 %v2406_v55 }
 0x51d   : > { %v1310_v46 = vpop.f32.mrb[8].mxu1 }
 0x51e   : > { %v1362_v47 = vcombine.low %v1218_v36, %v1310_v46  ;;  %v1363_v48 = vcombine.high %v1218_v36, %v1310_v46  ;;  %v2159_v49 = vpop.f32.mrb[9].mxu1  ;;  %2178 = vmatpush3.bf16.msra.mxu0 %v2280_v45  ;;  %v2282_v46 = vld [vmem:[%s2620_s7 + $0x8] sm:$0xff]  }
 0x51f   : > { %v1313_v50 = vpop.f32.mrb[10].mxu1 }
 0x520   : > { %v1370_v53 = vrot.slane %v1362_v47, %v2634_v14  ;;  %v1377_v54 = vrot.slane %v1363_v48, %v2634_v14  ;;  %v2160_v56 = vpop.f32.mrb[11].mxu1 }
 0x522   : > { %v1394_v58 = vcombine.low %v1370_v53, %v1386_v51  ;;  %v1395_v60 = vcombine.high %v1370_v53, %v1386_v51  ;;  %v1410_v59 = vcombine.low %v1377_v54, %v1393_v52  ;;  %v1411_v62 = vcombine.high %v1377_v54, %v1393_v52  ;;  %v2055_v51 = vld [vmem:[%s2955_s15] ss:$0 sm:$0xff] }
 0x523   : > { %v2056_v53 = vld [vmem:[%s2956_s0] ss:$0 sm:$0xff] }
 0x524   : > { %v1402_v0 = vrot.slane %v1394_v58, %v2638_v20  ;;  %v1409_v2 = vrot.slane %v1395_v60, %v2638_v20  ;;  %v1418_v3 = vrot.slane %v1410_v59, %v2638_v20  ;;  %v1425_v4 = vrot.slane %v1411_v62, %v2638_v20  ;;  %v2283_v60 = vld [vmem:[%s2620_s7 + $0x10] sm:$0xff]   ;;  %v2284_v59 = vld [vmem:[%s2620_s7 + $0x18] sm:$0xff]   ;;  %v2057_v62 = vld [vmem:[%s635_s16] ss:$0 sm:$0xff] }
 0x526   : > { %v1430_v5 = vcombine.low %v1402_v0, %v1409_v2  ;;  %v2049_v6 = vcombine.high %v1402_v0, %v1409_v2  ;;  %v1446_v7 = vcombine.low %v1418_v3, %v1425_v4  ;;  %v2050_v8 = vcombine.high %v1418_v3, %v1425_v4 }
 0x528   : > { %v1437_v10 = vrot.slane %v1430_v5, %v2634_v14  ;;  %v1445_v11 = vrot.slane %v2049_v6, %v2634_v14  ;;  %v1453_v12 = vrot.slane %v1446_v7, %v2634_v14  ;;  %v1461_v13 = vrot.slane %v2050_v8, %v2634_v14 }
 0x52a   : > { %v1463_v15 = vcombine.high %v1437_v10, %v1445_v11  ;;  %v1479_v16 = vcombine.high %v1453_v12, %v1461_v13  ;;  %v1462_v17 = vcombine.low %v1437_v10, %v1445_v11  ;;  %v1478_v18 = vcombine.low %v1453_v12, %v1461_v13 }
 0x52c   : > { %v1477_v57 = vrot.slane %v1463_v15, %v2638_v20  ;;  %v1493_v61 = vrot.slane %v1479_v16, %v2638_v20  ;;  %v1470_v19 = vrot.slane %v1462_v17, %v2638_v20  ;;  %v1486_v21 = vrot.slane %v1478_v18, %v2638_v20 }
 0x52e   : > { %v1496_v22 = vcombine.low %v1477_v57, %v1493_v61  ;;  %v1495_v23 = vcombine.high %v1470_v19, %v1486_v21  ;;  %v1497_v24 = vcombine.high %v1477_v57, %v1493_v61  ;;  %v1494_v25 = vcombine.low %v1470_v19, %v1486_v21 }
 0x530   : > { %1503 = vrot.lane.b32.xlu0 %v1496_v22, %s2408_s30  ;;  %1499 = vrot.lane.b32.xlu1 %v1495_v23, %s2409_s21  ;;  %s2959_s30 = sld [smem:[#allocation26_spill]] }
 0x534   : > { %1507 = vrot.lane.b32.xlu1 %v1497_v24, %s2410_s12 }
 0x536   : > { %s2960_s21 = scalar_lea.vmem %s2959_s30, %s2563_s22 }
 0x537   : > { %v2067_v23 = vld [vmem:[%s2960_s21] ss:$0 sm:$0xff] }
 0x5a2   : > { %v1500_v14 = vpop.permute.xlu1 %1499  ;;  %v1504_v26 = vpop.permute.xlu0 %1503 }
 0x5a3   : > { %v1510_v27 = vsel %vm807_vm2, %v1494_v25, %v1500_v14  ;;  %v2068_v25 = vld [vmem:[%s627_s29] ss:$0 sm:$0xff] }
 0x5a4   : > { %v1512_v29 = vsel %vm1511_vm5, %v1510_v27, %v1504_v26 }
 0x5a6   : > { %v1508_v28 = vpop.permute.xlu1 %1507 }
 0x5a7   : > { %v1514_v20 = vsel %vm1513_vm6, %v1512_v29, %v1508_v28 }
 0x5a8   : > { %v1515_v30 = vpack.c.bf16 %v1514_v20, %v1514_v20 }
 0x5aa   : > { %2172 = vmatmul.mubr.msk.bf16.vlgmr.msra.gmra.mrb[12].mxu1 %vm1539_vm7, %v1515_v30 }
 0x5ab   : > { %2191 = vmatprep.mubr.msk.bf16.mxu1 %vm2407_vm4, %v2406_v55 }
 0x67d   : > { %v1577_v32 = vpop.f32.mrb[12].mxu1 }
 0x67e   : > { %v1578_v33 = vadd.f32 %v2051_v31, %v1577_v32  ;;  %v2173_v34 = vpop.f32.mrb[13].mxu1 }
 0x67f   : > { %v1580_v35 = vpop.f32.mrb[14].mxu1 }
 0x680   : > { %v2174_v36 = vpop.f32.mrb[15].mxu1  ;;  %v1585_v37 = vadd.f32 %v1578_v33, %v2625_v1  ;;  %v2281_v1 = vld [vmem:[%s2620_s7] sm:$0xff]   ;;  %s2958_s7 = sld [smem:[#allocation12_spill]] }
 0x681   : > { %2184 = vmatpush3.bf16.msra.mxu1 %v2281_v1 }
 0x682   : > { %v1588_v38 = vsel %vm1539_vm7, %v1585_v37, 0.0  ;;  %2185 = vmatprep.subr.bf16.mxu1 %v2406_v55 }
 0x683   : > { %1589 = vadd.xlane.f32.xlu0 %v1588_v38 }
 0x685   : > { %2186 = vmatpush3.bf16.msra.mxu1 %v2282_v46 }
 0x686   : > { %2187 = vmatprep.subr.bf16.mxu1 %v2406_v55  ;;  %p1799_p1 = scmp.eq.s32.totalorder %s2958_s7, 1 }
 0x689   : > { %2188 = vmatpush3.bf16.msra.mxu1 %v2283_v60 }
 0x68a   : > { %2189 = vmatprep.subr.bf16.mxu1 %v2406_v55  ;;  %v2061_v55 = vld [vmem:[%s643_s18] ss:$0 sm:$0xff] }
 0x68d   : > { %2190 = vmatpush3.bf16.msra.mxu1 %v2284_v59 }
 0x710   : > { %v1590_v39 = vpop.xlane.xlu0 %1589 }
 0x711   : > { %v1592_v40 = vmul.f32 0.03125, %v1590_v39 }
 0x713   : > { %v1593_v41 = vsub.f32 %v1585_v37, %v1592_v40 }
 0x715   : > { %v1594_v42 = vmul.f32 %v1593_v41, %v1593_v41 }
 0x717   : > { %v1595_v43 = vsel %vm1539_vm7, %v1594_v42, 0.0 }
 0x718   : > { %1596 = vadd.xlane.f32.xlu1 %v1595_v43 }
 0x7a5   : > { %v1597_v47 = vpop.xlane.xlu1 %1596 }
 0x7a6   : > { %v1598_v48 = vmul.f32 0.03125, %v1597_v47 }
 0x7a8   : > { %v1599_v49 = vadd.f32 1e-05, %v1598_v48 }
 0x7aa   : > { %2301 = vrsqrt.f32 %v1599_v49 }
 0x7b4   : > { %v2302_v50 = vpop.eup %2301 }
 0x7b5   : > { %v1601_v52 = vmul.f32 %v2302_v50, %v1593_v41 }
 0x7b7   : > { %v1608_v54 = vmul.f32 %v2055_v51, %v1601_v52 }
 0x7b9   : > { %v1615_v56 = vadd.f32 %v2056_v53, %v1608_v54 }
 0x7bb   : > { %v1616_v58 = vpack.c.bf16 %v1615_v56, %v1615_v56 }
 0x7bd   : > { %2180 = vmatmul.mubr.msk.bf16.vlgmr.msra.gmra.mrb[24].mxu0 %vm1539_vm7, %v1616_v58 }
 0x890   : > { %v1677_v63 = vpop.f32.mrb[24].mxu0 }
 0x891   : > { %v1678_v0 = vadd.f32 %v2057_v62, %v1677_v63  ;;  %v2181_v2 = vpop.f32.mrb[25].mxu0 }
 0x892   : > { %v1680_v3 = vpop.f32.mrb[26].mxu0 }
 0x893   : > { %v1683_v4 = vmax.f32 %v1678_v0, 0.0  ;;  %v2182_v5 = vpop.f32.mrb[27].mxu0 }
 0x895   : > { %v1684_v6 = vpack.c.bf16 %v1683_v4, %v1683_v4 }
 0x897   : > { %2192 = vmatmul.mubr.msk.bf16.vlgmr.msra.gmra.mrb[16].mxu1 %vm1724_vm8, %v1684_v6 }
 0x96a   : > { %v1762_v7 = vpop.f32.mrb[16].mxu1 }
 0x96b   : > { %v1763_v8 = vadd.f32 %v2061_v55, %v1762_v7  ;;  %v2193_v9 = vpop.f32.mrb[17].mxu1 }
 0x96c   : > { %v1765_v10 = vpop.f32.mrb[18].mxu1 }
 0x96d   : > { %v2194_v11 = vpop.f32.mrb[19].mxu1  ;;  %v1768_v12 = vadd.f32 %v1763_v8, %v1615_v56 }
 0x96f   : > { %v1771_v13 = vsel %vm1539_vm7, %v1768_v12, 0.0 }
 0x970   : > { %1772 = vadd.xlane.f32.xlu0 %v1771_v13 }
 0x9fd   : > { %v1773_v15 = vpop.xlane.xlu0 %1772 }
 0x9fe   : > { %v1774_v16 = vmul.f32 0.03125, %v1773_v15 }
 0xa00   : > { %v1775_v17 = vsub.f32 %v1768_v12, %v1774_v16 }
 0xa02   : > { %v1776_v18 = vmul.f32 %v1775_v17, %v1775_v17 }
 0xa04   : > { %v1777_v57 = vsel %vm1539_vm7, %v1776_v18, 0.0 }
 0xa05   : > { %1778 = vadd.xlane.f32.xlu0 %v1777_v57 }
 0xa92   : > { %v1779_v61 = vpop.xlane.xlu0 %1778 }
 0xa93   : > { %v1780_v19 = vmul.f32 0.03125, %v1779_v61 }
 0xa95   : > { %v1781_v21 = vadd.f32 1e-05, %v1780_v19 }
 0xa97   : > { %2303 = vrsqrt.f32 %v1781_v21 }
 0xaa1   : > { %v2304_v22 = vpop.eup %2303 }
 0xaa2   : > { %v1783_v24 = vmul.f32 %v2304_v22, %v1775_v17  ;;  %1803 = sbr.rel (!%p1799_p1) target bundleno = 2737 (0xab1), region = 84 }
 0xaa4   : > { %v1790_v14 = vmul.f32 %v2067_v23, %v1783_v24 }
 0xaa6   : > { %v1797_v26 = vadd.f32 %v2068_v25, %v1790_v14 }
 0xaa8   : > { %1798 = vst.msk [vmem:[#allocation2] sm:$0xff] %vm1539_vm7, %v1797_v26 }
 0xaaf   : > { %v1804_v27 = vld [vmem:[#allocation2] sm:$0xff] }
 0xab0   : > { %1805 = vst.msk [vmem:[%s596_s2] sm:$0xff] %vm1539_vm7, %v1804_v27 }
 0xab1 PF: > { %s2961_s24 = sld [smem:[#allocation13_spill]]  ;;  %s2962_s23 = sld [smem:[#allocation10_spill]] }
 0xab2   : > { %s2964_s22 = sld [smem:[#allocation29_spill]]  ;;  %s1820_s3 = sshll.u32 %s596_s2, 4  ;;  %s1821_s3 = int_to_ptr.vmem [resolvable:$true] %s1820_s3 }
 0xab3   : > { %s2305_s13 = scalar_lea.vmem %s1821_s3, 128  ;;  %s2411_s28 = smov [#allocation6]  }
 0xab4   : > { %p2306_p2 = scmp.ne.s32.totalorder %s1821_s3, %s2305_s13  ;;  %s2309_s20 = sshll.u32 %s2411_s28, 4  ;;  %s2310_s20 = int_to_ptr.vmem [resolvable:$false] %s2309_s20 }
 0xab5   : > { %s2311_s19 = scalar_lea.vmem %s2310_s20, 256  ;;  %p2312_p6 = scmp.lt.s32.totalorder %s1821_s3, %s2310_s20 }
 0xab6   : > { %p2307_p4 = pnand %p2306_p2, %p2531_p3  ;;  %p2313_p7 = scmp.lt.s32.totalorder %s2311_s19, %s2305_s13 }
 0xab7   : > { %s2071_s25 = sshll.u32 %s2961_s24, 7  ;;  %s2965_s0 = sand.u32 1, %s2962_s23  }
 0xab8   : > { %s2841_s29 = scalar_lea.hbm %s2964_s22, %s2071_s25  ;;  %s1807_s27 = scalar_lea.sflag [#allocation7], %s2965_s0 }
 0xab9   : > { %p2308_p5 = pneg %p2307_p4  ;;  %p2314_p8 = por %p2313_p7, %p2312_p6 }
 0xabb   : > { %p2315_p10 = pnand %p2314_p8, %p2308_p5 }
 0xabd   : > { %2318 = shalt.err (!%p2315_p10)
}
 0xabe   : > { %s2319_s17 = scalar_lea.hbm %s2841_s29, 128  ;;  %s2323_s18 = scalar_lea.hbm %s2964_s22, 256 }
 0xabf   : > { %p2320_p11 = scmp.ne.s32.totalorder %s2841_s29, %s2319_s17  ;;  %p2324_p0 = scmp.lt.u32.totalorder %s2841_s29, %s2964_s22 }
 0xac0   : > { %p2325_p1 = scmp.lt.u32.totalorder %s2323_s18, %s2319_s17  ;;  %p2327_p4 = scmp.lt.u32.totalorder %s2319_s17, %s2841_s29 }
 0xac1   : > { %p2321_p12 = pnand %p2320_p11, %p2531_p3 }
 0xac2   : > { %p2326_p2 = por %p2325_p1, %p2324_p0 }
 0xac3   : > { %p2322_p13 = pneg %p2321_p12 }
 0xac4   : > { %p2328_p5 = por %p2327_p4, %p2326_p2 }
 0xac6   : > { %p2329_p6 = pnand %p2328_p5, %p2322_p13 }
 0xac8   : > { %2332 = shalt.err (!%p2329_p6)
}
 0xac9   : > { %2196 = dma.vmem_to_hbm [thread:$0]  (%p2531_p3), %s1821_s3, 128, %s2841_s29, %s1807_s27  }
 0xaca PF: > { %s2966_s21 = sld [smem:[#allocation16_spill]]  ;;  %s2967_s12 = sld [smem:[#allocation9_spill]] }
 0xad0   : > { %p2202_p7 = scmp.ge.s32.totalorder %s2966_s21, 2  ;;  %s1832_s24 = sand.u32 1, %s2967_s12  }
 0xad1   : > { %s1833_s23 = scalar_lea.sflag [#allocation7], %s1832_s24 }
 0xad2   : > { %p2199_p8 = pnand %p2202_p7, %p2541_p9 }
 0xad4   : > { %2366 = dma.done.wait (!%p2199_p8), %s1833_s23, 128  }
 0xad5   : > { %2368 = vsyncadd (!%p2199_p8), %s1833_s23, 4294967168  ;;  %s26_s15 = sadd.s32 1, %s2966_s21   ;;  %s2969_s25 = sld [smem:[#allocation10_spill]] }
 0xad6   : > { %p23_p10 = scmp.ge.s32.totalorder %s26_s15, 6   ;;  %s2970_s26 = sld [smem:[#allocation11_spill]] }
 0xad7   : > { %s2971_s27 = sld [smem:[#allocation21_spill]]  ;;  %s2972_s28 = sld [smem:[#allocation14_spill]] }
 0xad8   : > { %s2973_s29 = sld [smem:[#allocation15_spill]]  ;;  %s2974_s30 = sld [smem:[#allocation17_spill]] }
 0xad9   : > { %s2975_s14 = sld [smem:[#allocation19_spill]]  ;;  %25 = sbr.rel (!%p23_p10) target bundleno = 13 (0xd), region = 157 }
 0xae0   :  { %1838 = vsyncpa [#allocation7], 1 }
 0xae1   :  { %1840 = vsyncpa [#allocation7 + $0x1], 1 }

</bundles_post_ra>
